<compile_context>
chip_gen: v6e
topology: v6e:2x2x1
jax: 0.10.0
libtpu: 0.0.40
codegen_flags: <defaults>
</compile_context>

<pallas_src>
import jax
import jax.numpy as jnp
from jax import lax
from jax.experimental import pallas as pl
from jax.experimental.pallas import tpu as pltpu


def _rnn_alpha_kernel(a_ref, wih_ref, whh_ref, b_ref, wlin_ref, blin_ref,
                      alpha_ref, hN_ref, cN_ref, pre_scr, hs_scr):
    L, NB, D = a_ref.shape
    H = whh_ref.shape[0]
    G4 = whh_ref.shape[1]        # 4 * H
    KP = wlin_ref.shape[1]       # padded K (multiple of 8)
    H3 = 3 * H

    # ---- input projection, hoisted out of the recurrence (one MXU matmul) ---
    a_all = a_ref[...].reshape(L * NB, D)
    pre = jnp.dot(a_all, wih_ref[...], preferred_element_type=jnp.float32)
    pre = pre + b_ref[...]                        # b == b_ih + b_hh
    pre_scr[...] = pre.reshape(L, NB, G4)

    whh = whh_ref[...]                            # loop-invariant, load once

    # ---- sequential LSTM recurrence: one fused 4-gate matmul per step -------
    # NOTE: per-step RHS refeed could be removed by staging W_hh in the MXU
    # (pltpu.matmul_push_rhs / matmul_acc_lhs / matmul_pop); deferred -- see
    # header comment.
    def step(t, carry):
        h, c = carry
        gates = pre_scr[t] + jnp.dot(h, whh, preferred_element_type=jnp.float32)
        # Gate columns were permuted in the wrapper to (i, f, o, g): the three
        # sigmoid gates are lane-contiguous -> 1 sigmoid + 1 tanh EUP issue.
        sig = jax.nn.sigmoid(gates[:, :H3])
        i_g = sig[:, 0:H]
        f_g = sig[:, H:2 * H]
        o_g = sig[:, 2 * H:H3]
        g_g = jnp.tanh(gates[:, H3:G4])
        c = f_g * c + i_g * g_g
        h = o_g * jnp.tanh(c)
        hs_scr[t] = h                              # time-major, no epilogue transpose
        return (h, c)

    zeros = jnp.zeros((NB, H), jnp.float32)
    h_n, c_n = lax.fori_loop(0, L, step, (zeros, zeros), unroll=min(L, 8))

    # Final state written exactly once (no per-step h/c stores).
    hN_ref[...] = h_n.astype(hN_ref.dtype)
    cN_ref[...] = c_n.astype(cN_ref.dtype)

    # ---- linear head + softmax, hoisted out of the recurrence ---------------
    hs = hs_scr[...].reshape(L * NB, H)
    logits = jnp.dot(hs, wlin_ref[...], preferred_element_type=jnp.float32)
    logits = logits + blin_ref[...]               # padded lanes get -1e30
    m = jnp.max(logits, axis=-1, keepdims=True)
    e = jnp.exp(logits - m)
    # Exact divide kept so results match the f32 reference to 1e-5; runs once
    # per tile, off the serial critical path.
    alpha = e / jnp.sum(e, axis=-1, keepdims=True)
    alpha_ref[...] = alpha.reshape(L, NB, KP).astype(alpha_ref.dtype)


def _round_up(x, m):
    return (x + m - 1) // m * m


def _num_tensorcores():
    """Best-effort TensorCores-per-chip detection (v7x has 2, else 1)."""
    try:
        kind = jax.devices()[0].device_kind.lower()
        if "v7" in kind:
            return 2
    except Exception:
        pass
    return 1


def rnn_alpha_forward(a, params, *, batch_block=None):
    """a: (L, N, D) float32.  Returns (alpha (N, L, K), (h_n, c_n))."""
    L, N, D = a.shape
    wih_t = params["w_ih_t"]     # (D, 4H)
    whh_t = params["w_hh_t"]     # (H, 4H)
    b = params["b"]              # (1, 4H) == b_ih + b_hh
    wlin_t = params["w_lin_t"]   # (H, K)
    blin = params["b_lin"]       # (1, K)
    H = whh_t.shape[0]
    K = wlin_t.shape[1]

    # Reorder gate columns from PyTorch (i, f, g, o) to (i, f, o, g) so the
    # three sigmoid gates are lane-contiguous inside the kernel.
    perm = jnp.concatenate([jnp.arange(0, 2 * H),
                            jnp.arange(3 * H, 4 * H),
                            jnp.arange(2 * H, 3 * H)])
    wih_p = wih_t[:, perm]
    whh_p = whh_t[:, perm]
    b_p = b[:, perm]

    # Pad batch to the 8-sublane width; pad K only to a multiple of 8 so the
    # alpha HBM writeback is not dominated by padding bytes.
    N_pad = _round_up(max(N, 8), 8)
    K_pad = _round_up(K, 8)

    if batch_block is not None:
        NB = batch_block
    elif _num_tensorcores() >= 2 and N_pad >= 16 and (N_pad // 2) % 8 == 0:
        NB = N_pad // 2            # >=2 grid tiles so both v7x TCs get work
    else:
        NB = N_pad                 # single-TC chips: one maximal tile
    assert N_pad % NB == 0 and NB % 8 == 0

    a_pad = jnp.pad(a.astype(jnp.float32), ((0, 0), (0, N_pad - N), (0, 0)))
    wlin_pad = jnp.pad(wlin_t, ((0, 0), (0, K_pad - K)))
    # Padded logit lanes get a huge negative bias -> exp underflows to 0, so
    # the softmax over the padded K_pad row equals the softmax over K.
    blin_pad = jnp.pad(blin, ((0, 0), (0, K_pad - K)), constant_values=-1e30)

    # Explicit VMEM budget (f32 bytes, with double-buffering where Pallas
    # applies it) -> vmem_limit_bytes, instead of per-chip scoped defaults.
    vmem_est = 4 * (
        2 * L * NB * D                              # a tile (double-buffered)
        + L * NB * 4 * H + L * NB * H               # pre_scr + hs_scr
        + 2 * L * NB * K_pad + 2 * 2 * NB * H       # outputs (double-buffered)
        + 2 * (D * 4 * H + H * 4 * H + 4 * H + H * K_pad + K_pad))  # weights
    vmem_limit = int(min(max(2 * vmem_est, 16 << 20), 64 << 20))    # v7x cap

    # TODO(synk): caller-supplied initial hidden state `h` (PyTorch optional
    # arg) is not plumbed through; the kernel assumes the default zero state.
    grid_spec = pltpu.PrefetchScalarGridSpec(
        num_scalar_prefetch=0,
        grid=(N_pad // NB,),                     # batch tiles only; time is
        in_specs=[                               # an in-kernel fori_loop
            pl.BlockSpec((L, NB, D), lambda n: (0, n, 0)),      # a tile
            # NOTE: when H scales, set pipeline_mode=pl.Buffered(1) on these
            # constant-index weight specs (or DMA them once manually) so they
            # are neither double-buffered nor re-fetched per batch tile.
            pl.BlockSpec((D, 4 * H), lambda n: (0, 0)),         # W_ih^T (perm)
            pl.BlockSpec((H, 4 * H), lambda n: (0, 0)),         # W_hh^T (perm)
            pl.BlockSpec((1, 4 * H), lambda n: (0, 0)),         # b_ih + b_hh
            pl.BlockSpec((H, K_pad), lambda n: (0, 0)),         # W_lin^T (pad)
            pl.BlockSpec((1, K_pad), lambda n: (0, 0)),         # b_lin (pad)
        ],
        out_specs=[
            pl.BlockSpec((L, NB, K_pad), lambda n: (0, n, 0)),  # alpha, L-major
            pl.BlockSpec((NB, H), lambda n: (n, 0)),            # h_n
            pl.BlockSpec((NB, H), lambda n: (n, 0)),            # c_n
        ],
        scratch_shapes=[
            pltpu.VMEM((L, NB, 4 * H), jnp.float32),   # hoisted pre-gates
            pltpu.VMEM((L, NB, H), jnp.float32),       # hidden states (time-major)
        ],
    )

    alpha_pad, h_n, c_n = pl.pallas_call(
        _rnn_alpha_kernel,
        out_shape=(
            jax.ShapeDtypeStruct((L, N_pad, K_pad), jnp.float32),
            jax.ShapeDtypeStruct((N_pad, H), jnp.float32),
            jax.ShapeDtypeStruct((N_pad, H), jnp.float32),
        ),
        grid_spec=grid_spec,
        compiler_params=pltpu.CompilerParams(
            # Batch tiles are fully independent -> megacore-parallel on v7x.
            dimension_semantics=("parallel",),
            vmem_limit_bytes=vmem_limit),
    )(a_pad, wih_p, whh_p, b_p, wlin_pad, blin_pad)

    # Slice away padding first, then transpose the tiny (L, N, K) result to
    # the module's (N, L, K) output layout (mirrors the PyTorch .transpose).
    alpha = jnp.transpose(alpha_pad[:, :N, :K], (1, 0, 2))
    return alpha, (h_n[:N][None], c_n[:N][None])


def _reference_forward(a, params):
    """Pure-JAX reference (lax.scan) for correctness checking."""
    wih_t, whh_t, b = params["w_ih_t"], params["w_hh_t"], params["b"]
    wlin_t, blin = params["w_lin_t"], params["b_lin"]
    L, N, D = a.shape
    H = whh_t.shape[0]

    def step(carry, x_t):
        h, c = carry
        gates = x_t @ wih_t + h @ whh_t + b
        i = jax.nn.sigmoid(gates[:, 0:H])
        f = jax.nn.sigmoid(gates[:, H:2 * H])
        g = jnp.tanh(gates[:, 2 * H:3 * H])
        o = jax.nn.sigmoid(gates[:, 3 * H:4 * H])
        c = f * c + i * g
        h = o * jnp.tanh(c)
        return (h, c), h

    (h_n, c_n), hs = lax.scan(step, (jnp.zeros((N, H)), jnp.zeros((N, H))), a)
    logits = hs.reshape(L * N, H) @ wlin_t + blin
    alpha = jax.nn.softmax(logits, axis=-1).reshape(L, N, -1)
    return jnp.transpose(alpha, (1, 0, 2)), (h_n[None], c_n[None])


def init_params(key, input_size, hidden_size, K):
    """Deterministic synthetic parameters (PyTorch-style uniform init)."""
    ks = jax.random.split(key, 6)
    bound = 1.0 / jnp.sqrt(hidden_size)
    u = lambda k, shape: jax.random.uniform(k, shape, jnp.float32, -bound, bound)
    w_ih = u(ks[0], (4 * hidden_size, input_size))      # PyTorch (4H, D)
    w_hh = u(ks[1], (4 * hidden_size, hidden_size))     # PyTorch (4H, H)
    b_ih = u(ks[2], (4 * hidden_size,))
    b_hh = u(ks[3], (4 * hidden_size,))
    w_lin = u(ks[4], (K, hidden_size))                  # PyTorch (K, H)
    b_lin = u(ks[5], (K,))
    return {
        "w_ih_t": w_ih.T,                               # (D, 4H)
        "w_hh_t": w_hh.T,                               # (H, 4H)
        "b": (b_ih + b_hh)[None, :],                    # (1, 4H)
        "w_lin_t": w_lin.T,                             # (H, K)
        "b_lin": b_lin[None, :],                        # (1, K)
    }


if __name__ == "__main__":
    L, N, D, H, K = 8, 2, 4, 32, 3   # seq, batch, input dim, hidden, mixtures

    key = jax.random.PRNGKey(0)
    k_a, k_p = jax.random.split(key)
    a = jax.random.normal(k_a, (L, N, D), jnp.float32)
    params = init_params(k_p, D, H, K)

    alpha, (h_n, c_n) = jax.block_until_ready(rnn_alpha_forward(a, params))

    alpha_ref, (h_ref, c_ref) = _reference_forward(a, params)
    assert alpha.shape == (N, L, K)
    assert h_n.shape == (1, N, H) and c_n.shape == (1, N, H)
    assert jnp.allclose(alpha, alpha_ref, atol=1e-5, rtol=1e-5)
    assert jnp.allclose(h_n, h_ref, atol=1e-5, rtol=1e-5)
    assert jnp.allclose(c_n, c_ref, atol=1e-5, rtol=1e-5)

    print("KERNEL_OK")
</pallas_src>

<mosaic_0001>
module attributes {stable_mosaic.version = 11 : i64} {
  func.func @_rnn_alpha_kernel(%arg0: i32, %arg1: memref<8x8x4xf32, #tpu.memory_space<vmem>>, %arg2: memref<4x128xf32, #tpu.memory_space<vmem>>, %arg3: memref<32x128xf32, #tpu.memory_space<vmem>>, %arg4: memref<1x128xf32, #tpu.memory_space<vmem>>, %arg5: memref<32x8xf32, #tpu.memory_space<vmem>>, %arg6: memref<1x8xf32, #tpu.memory_space<vmem>>, %arg7: memref<8x8x8xf32, #tpu.memory_space<vmem>>, %arg8: memref<8x32xf32, #tpu.memory_space<vmem>>, %arg9: memref<8x32xf32, #tpu.memory_space<vmem>>, %arg10: memref<8x8x128xf32, #tpu.memory_space<vmem>>, %arg11: memref<8x8x32xf32, #tpu.memory_space<vmem>>) attributes {dimension_semantics = [#tpu.dimension_semantics<parallel>], iteration_bounds = array<i64: 1>, scalar_prefetch = 0 : i64, scratch_operands = 2 : i64, tpu.core_type = #tpu.core_type<tc>, window_params = [{transform_indices = @transform_0, window_bounds = array<i64: 8, 8, 4>}, {pipeline_mode = #tpu.pipeline_mode<synchronous>, transform_indices = @transform_1, window_bounds = array<i64: 4, 128>}, {pipeline_mode = #tpu.pipeline_mode<synchronous>, transform_indices = @transform_2, window_bounds = array<i64: 32, 128>}, {pipeline_mode = #tpu.pipeline_mode<synchronous>, transform_indices = @transform_3, window_bounds = array<i64: 1, 128>}, {pipeline_mode = #tpu.pipeline_mode<synchronous>, transform_indices = @transform_4, window_bounds = array<i64: 32, 8>}, {pipeline_mode = #tpu.pipeline_mode<synchronous>, transform_indices = @transform_5, window_bounds = array<i64: 1, 8>}, {transform_indices = @transform_6, window_bounds = array<i64: 8, 8, 8>}, {transform_indices = @transform_7, window_bounds = array<i64: 8, 32>}, {transform_indices = @transform_8, window_bounds = array<i64: 8, 32>}]} {
    %c0 = arith.constant 0 : index
    %c0_0 = arith.constant 0 : index
    %c0_1 = arith.constant 0 : index
    %0 = vector.load %arg1[%c0, %c0_0, %c0_1] : memref<8x8x4xf32, #tpu.memory_space<vmem>>, vector<8x8x4xf32>
    %1 = vector.shape_cast %0 : vector<8x8x4xf32> to vector<64x4xf32>
    %c0_2 = arith.constant 0 : index
    %c0_3 = arith.constant 0 : index
    %2 = vector.load %arg2[%c0_2, %c0_3] : memref<4x128xf32, #tpu.memory_space<vmem>>, vector<4x128xf32>
    %cst = arith.constant dense<0.000000e+00> : vector<64x128xf32>
    %3 = tpu.matmul %1, %2, %cst {dimension_numbers = #tpu.dot_dimension_numbers<[1], [0], [0], [1], [0, 0, 1, 1], [], []>} : vector<64x4xf32>, vector<4x128xf32>, vector<64x128xf32> -> vector<64x128xf32>
    %c0_4 = arith.constant 0 : index
    %c0_5 = arith.constant 0 : index
    %4 = vector.load %arg4[%c0_4, %c0_5] : memref<1x128xf32, #tpu.memory_space<vmem>>, vector<1x128xf32>
    %5 = vector.broadcast %4 : vector<1x128xf32> to vector<64x128xf32>
    %6 = arith.addf %3, %5 : vector<64x128xf32>
    %7 = vector.shape_cast %6 : vector<64x128xf32> to vector<8x8x128xf32>
    %c0_6 = arith.constant 0 : index
    %c0_7 = arith.constant 0 : index
    %c0_8 = arith.constant 0 : index
    %8 = vector.load %arg10[%c0_6, %c0_7, %c0_8] : memref<8x8x128xf32, #tpu.memory_space<vmem>>, vector<8x8x128xf32>
    tpu.vector_store %arg10[%c0_6, %c0_7, %c0_8], %7 {strides = array<i32>} : memref<8x8x128xf32, #tpu.memory_space<vmem>>, vector<8x8x128xf32>,
    %c0_9 = arith.constant 0 : index
    %c0_10 = arith.constant 0 : index
    %9 = vector.load %arg3[%c0_9, %c0_10] : memref<32x128xf32, #tpu.memory_space<vmem>>, vector<32x128xf32>
    %cst_11 = arith.constant 0.000000e+00 : f32
    %10 = vector.broadcast %cst_11 : f32 to vector<8x32xf32>
    %c0_i32 = arith.constant 0 : i32
    %11 = arith.index_cast %c0_i32 : i32 to index
    %c0_12 = arith.constant 0 : index
    %c0_13 = arith.constant 0 : index
    %12 = vector.load %arg10[%11, %c0_12, %c0_13] : memref<8x8x128xf32, #tpu.memory_space<vmem>>, vector<1x8x128xf32>
    %13 = vector.shape_cast %12 : vector<1x8x128xf32> to vector<8x128xf32>
    %cst_14 = arith.constant dense<0.000000e+00> : vector<8x128xf32>
    %14 = tpu.matmul %10, %9, %cst_14 {dimension_numbers = #tpu.dot_dimension_numbers<[1], [0], [0], [1], [0, 0, 1, 1], [], []>} : vector<8x32xf32>, vector<32x128xf32>, vector<8x128xf32> -> vector<8x128xf32>
    %15 = arith.addf %13, %14 : vector<8x128xf32>
    %16 = vector.extract_strided_slice %15 {offsets = [0, 0], sizes = [8, 96], strides = [1, 1]} : vector<8x128xf32> to vector<8x96xf32>
    %17 = arith.negf %16 : vector<8x96xf32>
    %18 = math.exp %17 : vector<8x96xf32>
    %cst_15 = arith.constant 1.000000e+00 : f32
    %19 = vector.broadcast %cst_15 : f32 to vector<8x96xf32>
    %20 = arith.addf %19, %18 : vector<8x96xf32>
    %21 = arith.divf %19, %20 : vector<8x96xf32>
    %22 = vector.extract_strided_slice %21 {offsets = [0, 0], sizes = [8, 32], strides = [1, 1]} : vector<8x96xf32> to vector<8x32xf32>
    %23 = vector.extract_strided_slice %21 {offsets = [0, 32], sizes = [8, 32], strides = [1, 1]} : vector<8x96xf32> to vector<8x32xf32>
    %24 = vector.extract_strided_slice %21 {offsets = [0, 64], sizes = [8, 32], strides = [1, 1]} : vector<8x96xf32> to vector<8x32xf32>
    %25 = vector.extract_strided_slice %15 {offsets = [0, 96], sizes = [8, 32], strides = [1, 1]} : vector<8x128xf32> to vector<8x32xf32>
    %26 = math.tanh %25 : vector<8x32xf32>
    %27 = arith.mulf %23, %10 : vector<8x32xf32>
    %28 = arith.mulf %22, %26 : vector<8x32xf32>
    %29 = arith.addf %27, %28 : vector<8x32xf32>
    %30 = math.tanh %29 : vector<8x32xf32>
    %31 = arith.mulf %24, %30 : vector<8x32xf32>
    %32 = arith.index_cast %c0_i32 : i32 to index
    %c0_16 = arith.constant 0 : index
    %c0_17 = arith.constant 0 : index
    %33 = vector.load %arg11[%32, %c0_16, %c0_17] : memref<8x8x32xf32, #tpu.memory_space<vmem>>, vector<1x8x32xf32>
    %34 = vector.shape_cast %33 : vector<1x8x32xf32> to vector<8x32xf32>
    %35 = vector.shape_cast %31 : vector<8x32xf32> to vector<1x8x32xf32>
    tpu.vector_store %arg11[%32, %c0_16, %c0_17], %35 {strides = array<i32>} : memref<8x8x32xf32, #tpu.memory_space<vmem>>, vector<1x8x32xf32>,
    %c1_i32 = arith.constant 1 : i32
    %36 = arith.index_cast %c1_i32 : i32 to index
    %c0_18 = arith.constant 0 : index
    %c0_19 = arith.constant 0 : index
    %37 = vector.load %arg10[%36, %c0_18, %c0_19] : memref<8x8x128xf32, #tpu.memory_space<vmem>>, vector<1x8x128xf32>
    %38 = vector.shape_cast %37 : vector<1x8x128xf32> to vector<8x128xf32>
    %cst_20 = arith.constant dense<0.000000e+00> : vector<8x128xf32>
    %39 = tpu.matmul %31, %9, %cst_20 {dimension_numbers = #tpu.dot_dimension_numbers<[1], [0], [0], [1], [0, 0, 1, 1], [], []>} : vector<8x32xf32>, vector<32x128xf32>, vector<8x128xf32> -> vector<8x128xf32>
    %40 = arith.addf %38, %39 : vector<8x128xf32>
    %41 = vector.extract_strided_slice %40 {offsets = [0, 0], sizes = [8, 96], strides = [1, 1]} : vector<8x128xf32> to vector<8x96xf32>
    %42 = arith.negf %41 : vector<8x96xf32>
    %43 = math.exp %42 : vector<8x96xf32>
    %cst_21 = arith.constant 1.000000e+00 : f32
    %44 = vector.broadcast %cst_21 : f32 to vector<8x96xf32>
    %45 = arith.addf %44, %43 : vector<8x96xf32>
    %46 = arith.divf %44, %45 : vector<8x96xf32>
    %47 = vector.extract_strided_slice %46 {offsets = [0, 0], sizes = [8, 32], strides = [1, 1]} : vector<8x96xf32> to vector<8x32xf32>
    %48 = vector.extract_strided_slice %46 {offsets = [0, 32], sizes = [8, 32], strides = [1, 1]} : vector<8x96xf32> to vector<8x32xf32>
    %49 = vector.extract_strided_slice %46 {offsets = [0, 64], sizes = [8, 32], strides = [1, 1]} : vector<8x96xf32> to vector<8x32xf32>
    %50 = vector.extract_strided_slice %40 {offsets = [0, 96], sizes = [8, 32], strides = [1, 1]} : vector<8x128xf32> to vector<8x32xf32>
    %51 = math.tanh %50 : vector<8x32xf32>
    %52 = arith.mulf %48, %29 : vector<8x32xf32>
    %53 = arith.mulf %47, %51 : vector<8x32xf32>
    %54 = arith.addf %52, %53 : vector<8x32xf32>
    %55 = math.tanh %54 : vector<8x32xf32>
    %56 = arith.mulf %49, %55 : vector<8x32xf32>
    %57 = arith.index_cast %c1_i32 : i32 to index
    %c0_22 = arith.constant 0 : index
    %c0_23 = arith.constant 0 : index
    %58 = vector.load %arg11[%57, %c0_22, %c0_23] : memref<8x8x32xf32, #tpu.memory_space<vmem>>, vector<1x8x32xf32>
    %59 = vector.shape_cast %58 : vector<1x8x32xf32> to vector<8x32xf32>
    %60 = vector.shape_cast %56 : vector<8x32xf32> to vector<1x8x32xf32>
    tpu.vector_store %arg11[%57, %c0_22, %c0_23], %60 {strides = array<i32>} : memref<8x8x32xf32, #tpu.memory_space<vmem>>, vector<1x8x32xf32>,
    %c2_i32 = arith.constant 2 : i32
    %61 = arith.index_cast %c2_i32 : i32 to index
    %c0_24 = arith.constant 0 : index
    %c0_25 = arith.constant 0 : index
    %62 = vector.load %arg10[%61, %c0_24, %c0_25] : memref<8x8x128xf32, #tpu.memory_space<vmem>>, vector<1x8x128xf32>
    %63 = vector.shape_cast %62 : vector<1x8x128xf32> to vector<8x128xf32>
    %cst_26 = arith.constant dense<0.000000e+00> : vector<8x128xf32>
    %64 = tpu.matmul %56, %9, %cst_26 {dimension_numbers = #tpu.dot_dimension_numbers<[1], [0], [0], [1], [0, 0, 1, 1], [], []>} : vector<8x32xf32>, vector<32x128xf32>, vector<8x128xf32> -> vector<8x128xf32>
    %65 = arith.addf %63, %64 : vector<8x128xf32>
    %66 = vector.extract_strided_slice %65 {offsets = [0, 0], sizes = [8, 96], strides = [1, 1]} : vector<8x128xf32> to vector<8x96xf32>
    %67 = arith.negf %66 : vector<8x96xf32>
    %68 = math.exp %67 : vector<8x96xf32>
    %cst_27 = arith.constant 1.000000e+00 : f32
    %69 = vector.broadcast %cst_27 : f32 to vector<8x96xf32>
    %70 = arith.addf %69, %68 : vector<8x96xf32>
    %71 = arith.divf %69, %70 : vector<8x96xf32>
    %72 = vector.extract_strided_slice %71 {offsets = [0, 0], sizes = [8, 32], strides = [1, 1]} : vector<8x96xf32> to vector<8x32xf32>
    %73 = vector.extract_strided_slice %71 {offsets = [0, 32], sizes = [8, 32], strides = [1, 1]} : vector<8x96xf32> to vector<8x32xf32>
    %74 = vector.extract_strided_slice %71 {offsets = [0, 64], sizes = [8, 32], strides = [1, 1]} : vector<8x96xf32> to vector<8x32xf32>
    %75 = vector.extract_strided_slice %65 {offsets = [0, 96], sizes = [8, 32], strides = [1, 1]} : vector<8x128xf32> to vector<8x32xf32>
    %76 = math.tanh %75 : vector<8x32xf32>
    %77 = arith.mulf %73, %54 : vector<8x32xf32>
    %78 = arith.mulf %72, %76 : vector<8x32xf32>
    %79 = arith.addf %77, %78 : vector<8x32xf32>
    %80 = math.tanh %79 : vector<8x32xf32>
    %81 = arith.mulf %74, %80 : vector<8x32xf32>
    %82 = arith.index_cast %c2_i32 : i32 to index
    %c0_28 = arith.constant 0 : index
    %c0_29 = arith.constant 0 : index
    %83 = vector.load %arg11[%82, %c0_28, %c0_29] : memref<8x8x32xf32, #tpu.memory_space<vmem>>, vector<1x8x32xf32>
    %84 = vector.shape_cast %83 : vector<1x8x32xf32> to vector<8x32xf32>
    %85 = vector.shape_cast %81 : vector<8x32xf32> to vector<1x8x32xf32>
    tpu.vector_store %arg11[%82, %c0_28, %c0_29], %85 {strides = array<i32>} : memref<8x8x32xf32, #tpu.memory_space<vmem>>, vector<1x8x32xf32>,
    %c3_i32 = arith.constant 3 : i32
    %86 = arith.index_cast %c3_i32 : i32 to index
    %c0_30 = arith.constant 0 : index
    %c0_31 = arith.constant 0 : index
    %87 = vector.load %arg10[%86, %c0_30, %c0_31] : memref<8x8x128xf32, #tpu.memory_space<vmem>>, vector<1x8x128xf32>
    %88 = vector.shape_cast %87 : vector<1x8x128xf32> to vector<8x128xf32>
    %cst_32 = arith.constant dense<0.000000e+00> : vector<8x128xf32>
    %89 = tpu.matmul %81, %9, %cst_32 {dimension_numbers = #tpu.dot_dimension_numbers<[1], [0], [0], [1], [0, 0, 1, 1], [], []>} : vector<8x32xf32>, vector<32x128xf32>, vector<8x128xf32> -> vector<8x128xf32>
    %90 = arith.addf %88, %89 : vector<8x128xf32>
    %91 = vector.extract_strided_slice %90 {offsets = [0, 0], sizes = [8, 96], strides = [1, 1]} : vector<8x128xf32> to vector<8x96xf32>
    %92 = arith.negf %91 : vector<8x96xf32>
    %93 = math.exp %92 : vector<8x96xf32>
    %cst_33 = arith.constant 1.000000e+00 : f32
    %94 = vector.broadcast %cst_33 : f32 to vector<8x96xf32>
    %95 = arith.addf %94, %93 : vector<8x96xf32>
    %96 = arith.divf %94, %95 : vector<8x96xf32>
    %97 = vector.extract_strided_slice %96 {offsets = [0, 0], sizes = [8, 32], strides = [1, 1]} : vector<8x96xf32> to vector<8x32xf32>
    %98 = vector.extract_strided_slice %96 {offsets = [0, 32], sizes = [8, 32], strides = [1, 1]} : vector<8x96xf32> to vector<8x32xf32>
    %99 = vector.extract_strided_slice %96 {offsets = [0, 64], sizes = [8, 32], strides = [1, 1]} : vector<8x96xf32> to vector<8x32xf32>
    %100 = vector.extract_strided_slice %90 {offsets = [0, 96], sizes = [8, 32], strides = [1, 1]} : vector<8x128xf32> to vector<8x32xf32>
    %101 = math.tanh %100 : vector<8x32xf32>
    %102 = arith.mulf %98, %79 : vector<8x32xf32>
    %103 = arith.mulf %97, %101 : vector<8x32xf32>
    %104 = arith.addf %102, %103 : vector<8x32xf32>
    %105 = math.tanh %104 : vector<8x32xf32>
    %106 = arith.mulf %99, %105 : vector<8x32xf32>
    %107 = arith.index_cast %c3_i32 : i32 to index
    %c0_34 = arith.constant 0 : index
    %c0_35 = arith.constant 0 : index
    %108 = vector.load %arg11[%107, %c0_34, %c0_35] : memref<8x8x32xf32, #tpu.memory_space<vmem>>, vector<1x8x32xf32>
    %109 = vector.shape_cast %108 : vector<1x8x32xf32> to vector<8x32xf32>
    %110 = vector.shape_cast %106 : vector<8x32xf32> to vector<1x8x32xf32>
    tpu.vector_store %arg11[%107, %c0_34, %c0_35], %110 {strides = array<i32>} : memref<8x8x32xf32, #tpu.memory_space<vmem>>, vector<1x8x32xf32>,
    %c4_i32 = arith.constant 4 : i32
    %111 = arith.index_cast %c4_i32 : i32 to index
    %c0_36 = arith.constant 0 : index
    %c0_37 = arith.constant 0 : index
    %112 = vector.load %arg10[%111, %c0_36, %c0_37] : memref<8x8x128xf32, #tpu.memory_space<vmem>>, vector<1x8x128xf32>
    %113 = vector.shape_cast %112 : vector<1x8x128xf32> to vector<8x128xf32>
    %cst_38 = arith.constant dense<0.000000e+00> : vector<8x128xf32>
    %114 = tpu.matmul %106, %9, %cst_38 {dimension_numbers = #tpu.dot_dimension_numbers<[1], [0], [0], [1], [0, 0, 1, 1], [], []>} : vector<8x32xf32>, vector<32x128xf32>, vector<8x128xf32> -> vector<8x128xf32>
    %115 = arith.addf %113, %114 : vector<8x128xf32>
    %116 = vector.extract_strided_slice %115 {offsets = [0, 0], sizes = [8, 96], strides = [1, 1]} : vector<8x128xf32> to vector<8x96xf32>
    %117 = arith.negf %116 : vector<8x96xf32>
    %118 = math.exp %117 : vector<8x96xf32>
    %cst_39 = arith.constant 1.000000e+00 : f32
    %119 = vector.broadcast %cst_39 : f32 to vector<8x96xf32>
    %120 = arith.addf %119, %118 : vector<8x96xf32>
    %121 = arith.divf %119, %120 : vector<8x96xf32>
    %122 = vector.extract_strided_slice %121 {offsets = [0, 0], sizes = [8, 32], strides = [1, 1]} : vector<8x96xf32> to vector<8x32xf32>
    %123 = vector.extract_strided_slice %121 {offsets = [0, 32], sizes = [8, 32], strides = [1, 1]} : vector<8x96xf32> to vector<8x32xf32>
    %124 = vector.extract_strided_slice %121 {offsets = [0, 64], sizes = [8, 32], strides = [1, 1]} : vector<8x96xf32> to vector<8x32xf32>
    %125 = vector.extract_strided_slice %115 {offsets = [0, 96], sizes = [8, 32], strides = [1, 1]} : vector<8x128xf32> to vector<8x32xf32>
    %126 = math.tanh %125 : vector<8x32xf32>
    %127 = arith.mulf %123, %104 : vector<8x32xf32>
    %128 = arith.mulf %122, %126 : vector<8x32xf32>
    %129 = arith.addf %127, %128 : vector<8x32xf32>
    %130 = math.tanh %129 : vector<8x32xf32>
    %131 = arith.mulf %124, %130 : vector<8x32xf32>
    %132 = arith.index_cast %c4_i32 : i32 to index
    %c0_40 = arith.constant 0 : index
    %c0_41 = arith.constant 0 : index
    %133 = vector.load %arg11[%132, %c0_40, %c0_41] : memref<8x8x32xf32, #tpu.memory_space<vmem>>, vector<1x8x32xf32>
    %134 = vector.shape_cast %133 : vector<1x8x32xf32> to vector<8x32xf32>
    %135 = vector.shape_cast %131 : vector<8x32xf32> to vector<1x8x32xf32>
    tpu.vector_store %arg11[%132, %c0_40, %c0_41], %135 {strides = array<i32>} : memref<8x8x32xf32, #tpu.memory_space<vmem>>, vector<1x8x32xf32>,
    %c5_i32 = arith.constant 5 : i32
    %136 = arith.index_cast %c5_i32 : i32 to index
    %c0_42 = arith.constant 0 : index
    %c0_43 = arith.constant 0 : index
    %137 = vector.load %arg10[%136, %c0_42, %c0_43] : memref<8x8x128xf32, #tpu.memory_space<vmem>>, vector<1x8x128xf32>
    %138 = vector.shape_cast %137 : vector<1x8x128xf32> to vector<8x128xf32>
    %cst_44 = arith.constant dense<0.000000e+00> : vector<8x128xf32>
    %139 = tpu.matmul %131, %9, %cst_44 {dimension_numbers = #tpu.dot_dimension_numbers<[1], [0], [0], [1], [0, 0, 1, 1], [], []>} : vector<8x32xf32>, vector<32x128xf32>, vector<8x128xf32> -> vector<8x128xf32>
    %140 = arith.addf %138, %139 : vector<8x128xf32>
    %141 = vector.extract_strided_slice %140 {offsets = [0, 0], sizes = [8, 96], strides = [1, 1]} : vector<8x128xf32> to vector<8x96xf32>
    %142 = arith.negf %141 : vector<8x96xf32>
    %143 = math.exp %142 : vector<8x96xf32>
    %cst_45 = arith.constant 1.000000e+00 : f32
    %144 = vector.broadcast %cst_45 : f32 to vector<8x96xf32>
    %145 = arith.addf %144, %143 : vector<8x96xf32>
    %146 = arith.divf %144, %145 : vector<8x96xf32>
    %147 = vector.extract_strided_slice %146 {offsets = [0, 0], sizes = [8, 32], strides = [1, 1]} : vector<8x96xf32> to vector<8x32xf32>
    %148 = vector.extract_strided_slice %146 {offsets = [0, 32], sizes = [8, 32], strides = [1, 1]} : vector<8x96xf32> to vector<8x32xf32>
    %149 = vector.extract_strided_slice %146 {offsets = [0, 64], sizes = [8, 32], strides = [1, 1]} : vector<8x96xf32> to vector<8x32xf32>
    %150 = vector.extract_strided_slice %140 {offsets = [0, 96], sizes = [8, 32], strides = [1, 1]} : vector<8x128xf32> to vector<8x32xf32>
    %151 = math.tanh %150 : vector<8x32xf32>
    %152 = arith.mulf %148, %129 : vector<8x32xf32>
    %153 = arith.mulf %147, %151 : vector<8x32xf32>
    %154 = arith.addf %152, %153 : vector<8x32xf32>
    %155 = math.tanh %154 : vector<8x32xf32>
    %156 = arith.mulf %149, %155 : vector<8x32xf32>
    %157 = arith.index_cast %c5_i32 : i32 to index
    %c0_46 = arith.constant 0 : index
    %c0_47 = arith.constant 0 : index
    %158 = vector.load %arg11[%157, %c0_46, %c0_47] : memref<8x8x32xf32, #tpu.memory_space<vmem>>, vector<1x8x32xf32>
    %159 = vector.shape_cast %158 : vector<1x8x32xf32> to vector<8x32xf32>
    %160 = vector.shape_cast %156 : vector<8x32xf32> to vector<1x8x32xf32>
    tpu.vector_store %arg11[%157, %c0_46, %c0_47], %160 {strides = array<i32>} : memref<8x8x32xf32, #tpu.memory_space<vmem>>, vector<1x8x32xf32>,
    %c6_i32 = arith.constant 6 : i32
    %161 = arith.index_cast %c6_i32 : i32 to index
    %c0_48 = arith.constant 0 : index
    %c0_49 = arith.constant 0 : index
    %162 = vector.load %arg10[%161, %c0_48, %c0_49] : memref<8x8x128xf32, #tpu.memory_space<vmem>>, vector<1x8x128xf32>
    %163 = vector.shape_cast %162 : vector<1x8x128xf32> to vector<8x128xf32>
    %cst_50 = arith.constant dense<0.000000e+00> : vector<8x128xf32>
    %164 = tpu.matmul %156, %9, %cst_50 {dimension_numbers = #tpu.dot_dimension_numbers<[1], [0], [0], [1], [0, 0, 1, 1], [], []>} : vector<8x32xf32>, vector<32x128xf32>, vector<8x128xf32> -> vector<8x128xf32>
    %165 = arith.addf %163, %164 : vector<8x128xf32>
    %166 = vector.extract_strided_slice %165 {offsets = [0, 0], sizes = [8, 96], strides = [1, 1]} : vector<8x128xf32> to vector<8x96xf32>
    %167 = arith.negf %166 : vector<8x96xf32>
    %168 = math.exp %167 : vector<8x96xf32>
    %cst_51 = arith.constant 1.000000e+00 : f32
    %169 = vector.broadcast %cst_51 : f32 to vector<8x96xf32>
    %170 = arith.addf %169, %168 : vector<8x96xf32>
    %171 = arith.divf %169, %170 : vector<8x96xf32>
    %172 = vector.extract_strided_slice %171 {offsets = [0, 0], sizes = [8, 32], strides = [1, 1]} : vector<8x96xf32> to vector<8x32xf32>
    %173 = vector.extract_strided_slice %171 {offsets = [0, 32], sizes = [8, 32], strides = [1, 1]} : vector<8x96xf32> to vector<8x32xf32>
    %174 = vector.extract_strided_slice %171 {offsets = [0, 64], sizes = [8, 32], strides = [1, 1]} : vector<8x96xf32> to vector<8x32xf32>
    %175 = vector.extract_strided_slice %165 {offsets = [0, 96], sizes = [8, 32], strides = [1, 1]} : vector<8x128xf32> to vector<8x32xf32>
    %176 = math.tanh %175 : vector<8x32xf32>
    %177 = arith.mulf %173, %154 : vector<8x32xf32>
    %178 = arith.mulf %172, %176 : vector<8x32xf32>
    %179 = arith.addf %177, %178 : vector<8x32xf32>
    %180 = math.tanh %179 : vector<8x32xf32>
    %181 = arith.mulf %174, %180 : vector<8x32xf32>
    %182 = arith.index_cast %c6_i32 : i32 to index
    %c0_52 = arith.constant 0 : index
    %c0_53 = arith.constant 0 : index
    %183 = vector.load %arg11[%182, %c0_52, %c0_53] : memref<8x8x32xf32, #tpu.memory_space<vmem>>, vector<1x8x32xf32>
    %184 = vector.shape_cast %183 : vector<1x8x32xf32> to vector<8x32xf32>
    %185 = vector.shape_cast %181 : vector<8x32xf32> to vector<1x8x32xf32>
    tpu.vector_store %arg11[%182, %c0_52, %c0_53], %185 {strides = array<i32>} : memref<8x8x32xf32, #tpu.memory_space<vmem>>, vector<1x8x32xf32>,
    %c7_i32 = arith.constant 7 : i32
    %186 = arith.index_cast %c7_i32 : i32 to index
    %c0_54 = arith.constant 0 : index
    %c0_55 = arith.constant 0 : index
    %187 = vector.load %arg10[%186, %c0_54, %c0_55] : memref<8x8x128xf32, #tpu.memory_space<vmem>>, vector<1x8x128xf32>
    %188 = vector.shape_cast %187 : vector<1x8x128xf32> to vector<8x128xf32>
    %cst_56 = arith.constant dense<0.000000e+00> : vector<8x128xf32>
    %189 = tpu.matmul %181, %9, %cst_56 {dimension_numbers = #tpu.dot_dimension_numbers<[1], [0], [0], [1], [0, 0, 1, 1], [], []>} : vector<8x32xf32>, vector<32x128xf32>, vector<8x128xf32> -> vector<8x128xf32>
    %190 = arith.addf %188, %189 : vector<8x128xf32>
    %191 = vector.extract_strided_slice %190 {offsets = [0, 0], sizes = [8, 96], strides = [1, 1]} : vector<8x128xf32> to vector<8x96xf32>
    %192 = arith.negf %191 : vector<8x96xf32>
    %193 = math.exp %192 : vector<8x96xf32>
    %cst_57 = arith.constant 1.000000e+00 : f32
    %194 = vector.broadcast %cst_57 : f32 to vector<8x96xf32>
    %195 = arith.addf %194, %193 : vector<8x96xf32>
    %196 = arith.divf %194, %195 : vector<8x96xf32>
    %197 = vector.extract_strided_slice %196 {offsets = [0, 0], sizes = [8, 32], strides = [1, 1]} : vector<8x96xf32> to vector<8x32xf32>
    %198 = vector.extract_strided_slice %196 {offsets = [0, 32], sizes = [8, 32], strides = [1, 1]} : vector<8x96xf32> to vector<8x32xf32>
    %199 = vector.extract_strided_slice %196 {offsets = [0, 64], sizes = [8, 32], strides = [1, 1]} : vector<8x96xf32> to vector<8x32xf32>
    %200 = vector.extract_strided_slice %190 {offsets = [0, 96], sizes = [8, 32], strides = [1, 1]} : vector<8x128xf32> to vector<8x32xf32>
    %201 = math.tanh %200 : vector<8x32xf32>
    %202 = arith.mulf %198, %179 : vector<8x32xf32>
    %203 = arith.mulf %197, %201 : vector<8x32xf32>
    %204 = arith.addf %202, %203 : vector<8x32xf32>
    %205 = math.tanh %204 : vector<8x32xf32>
    %206 = arith.mulf %199, %205 : vector<8x32xf32>
    %207 = arith.index_cast %c7_i32 : i32 to index
    %c0_58 = arith.constant 0 : index
    %c0_59 = arith.constant 0 : index
    %208 = vector.load %arg11[%207, %c0_58, %c0_59] : memref<8x8x32xf32, #tpu.memory_space<vmem>>, vector<1x8x32xf32>
    %209 = vector.shape_cast %208 : vector<1x8x32xf32> to vector<8x32xf32>
    %210 = vector.shape_cast %206 : vector<8x32xf32> to vector<1x8x32xf32>
    tpu.vector_store %arg11[%207, %c0_58, %c0_59], %210 {strides = array<i32>} : memref<8x8x32xf32, #tpu.memory_space<vmem>>, vector<1x8x32xf32>,
    %c8_i32 = arith.constant 8 : i32
    %c0_60 = arith.constant 0 : index
    %c0_61 = arith.constant 0 : index
    %211 = vector.load %arg8[%c0_60, %c0_61] : memref<8x32xf32, #tpu.memory_space<vmem>>, vector<8x32xf32>
    tpu.vector_store %arg8[%c0_60, %c0_61], %206 {strides = array<i32>} : memref<8x32xf32, #tpu.memory_space<vmem>>, vector<8x32xf32>,
    %c0_62 = arith.constant 0 : index
    %c0_63 = arith.constant 0 : index
    %212 = vector.load %arg9[%c0_62, %c0_63] : memref<8x32xf32, #tpu.memory_space<vmem>>, vector<8x32xf32>
    tpu.vector_store %arg9[%c0_62, %c0_63], %204 {strides = array<i32>} : memref<8x32xf32, #tpu.memory_space<vmem>>, vector<8x32xf32>,
    %c0_64 = arith.constant 0 : index
    %c0_65 = arith.constant 0 : index
    %c0_66 = arith.constant 0 : index
    %213 = vector.load %arg11[%c0_64, %c0_65, %c0_66] : memref<8x8x32xf32, #tpu.memory_space<vmem>>, vector<8x8x32xf32>
    %214 = vector.shape_cast %213 : vector<8x8x32xf32> to vector<64x32xf32>
    %c0_67 = arith.constant 0 : index
    %c0_68 = arith.constant 0 : index
    %215 = vector.load %arg5[%c0_67, %c0_68] : memref<32x8xf32, #tpu.memory_space<vmem>>, vector<32x8xf32>
    %cst_69 = arith.constant dense<0.000000e+00> : vector<64x8xf32>
    %216 = tpu.matmul %214, %215, %cst_69 {dimension_numbers = #tpu.dot_dimension_numbers<[1], [0], [0], [1], [0, 0, 1, 1], [], []>} : vector<64x32xf32>, vector<32x8xf32>, vector<64x8xf32> -> vector<64x8xf32>
    %c0_70 = arith.constant 0 : index
    %c0_71 = arith.constant 0 : index
    %217 = vector.load %arg6[%c0_70, %c0_71] : memref<1x8xf32, #tpu.memory_space<vmem>>, vector<1x8xf32>
    %218 = vector.broadcast %217 : vector<1x8xf32> to vector<64x8xf32>
    %219 = arith.addf %216, %218 : vector<64x8xf32>
    %cst_72 = arith.constant dense<0xFF800000> : vector<64xf32>
    %220 = vector.multi_reduction <maximumf>, %219, %cst_72 [1] : vector<64x8xf32> to vector<64xf32>
    %221 = vector.shape_cast %220 : vector<64xf32> to vector<64x1xf32>
    %222 = vector.broadcast %221 : vector<64x1xf32> to vector<64x8xf32>
    %223 = arith.subf %219, %222 : vector<64x8xf32>
    %224 = math.exp %223 : vector<64x8xf32>
    %cst_73 = arith.constant dense<0.000000e+00> : vector<64xf32>
    %225 = vector.multi_reduction <add>, %224, %cst_73 [1] : vector<64x8xf32> to vector<64xf32>
    %226 = vector.shape_cast %225 : vector<64xf32> to vector<64x1xf32>
    %227 = vector.broadcast %226 : vector<64x1xf32> to vector<64x8xf32>
    %228 = arith.divf %224, %227 : vector<64x8xf32>
    %229 = vector.shape_cast %228 : vector<64x8xf32> to vector<8x8x8xf32>
    %c0_74 = arith.constant 0 : index
    %c0_75 = arith.constant 0 : index
    %c0_76 = arith.constant 0 : index
    %230 = vector.load %arg7[%c0_74, %c0_75, %c0_76] : memref<8x8x8xf32, #tpu.memory_space<vmem>>, vector<8x8x8xf32>
    tpu.vector_store %arg7[%c0_74, %c0_75, %c0_76], %229 {strides = array<i32>} : memref<8x8x8xf32, #tpu.memory_space<vmem>>, vector<8x8x8xf32>,
    return
  }
  func.func @transform_0(%arg0: i32) -> (i32, i32, i32) {
    %c0_i32 = arith.constant 0 : i32
    %c0_i32_0 = arith.constant 0 : i32
    %c0_i32_1 = arith.constant 0 : i32
    return %c0_i32, %arg0, %c0_i32_0 : i32, i32, i32
  }
  func.func @transform_1(%arg0: i32) -> (i32, i32) {
    %c0_i32 = arith.constant 0 : i32
    %c0_i32_0 = arith.constant 0 : i32
    %c0_i32_1 = arith.constant 0 : i32
    return %c0_i32, %c0_i32_0 : i32, i32
  }
  func.func @transform_2(%arg0: i32) -> (i32, i32) {
    %c0_i32 = arith.constant 0 : i32
    %c0_i32_0 = arith.constant 0 : i32
    %c0_i32_1 = arith.constant 0 : i32
    return %c0_i32, %c0_i32_0 : i32, i32
  }
  func.func @transform_3(%arg0: i32) -> (i32, i32) {
    %c0_i32 = arith.constant 0 : i32
    %c0_i32_0 = arith.constant 0 : i32
    %c0_i32_1 = arith.constant 0 : i32
    return %c0_i32, %c0_i32_0 : i32, i32
  }
  func.func @transform_4(%arg0: i32) -> (i32, i32) {
    %c0_i32 = arith.constant 0 : i32
    %c0_i32_0 = arith.constant 0 : i32
    %c0_i32_1 = arith.constant 0 : i32
    return %c0_i32, %c0_i32_0 : i32, i32
  }
  func.func @transform_5(%arg0: i32) -> (i32, i32) {
    %c0_i32 = arith.constant 0 : i32
    %c0_i32_0 = arith.constant 0 : i32
    %c0_i32_1 = arith.constant 0 : i32
    return %c0_i32, %c0_i32_0 : i32, i32
  }
  func.func @transform_6(%arg0: i32) -> (i32, i32, i32) {
    %c0_i32 = arith.constant 0 : i32
    %c0_i32_0 = arith.constant 0 : i32
    %c0_i32_1 = arith.constant 0 : i32
    return %c0_i32, %arg0, %c0_i32_0 : i32, i32, i32
  }
  func.func @transform_7(%arg0: i32) -> (i32, i32) {
    %c0_i32 = arith.constant 0 : i32
    %c0_i32_0 = arith.constant 0 : i32
    return %arg0, %c0_i32 : i32, i32
  }
  func.func @transform_8(%arg0: i32) -> (i32, i32) {
    %c0_i32 = arith.constant 0 : i32
    %c0_i32_0 = arith.constant 0 : i32
    return %arg0, %c0_i32 : i32, i32
  }
}

</mosaic_0001>

<bundles_post_ra>
// kernel: tpu_custom_call.1
= control target key start
LH: loop header
LB: loop body
LE: loop exit
PB: predicated region body
PF: predicated region fallthrough
CT: control target
= control target key end

     0   :  { %14 = vsyncpa [#allocation5], 0  ;;  %vm69_vm0 = vcmask 1043456   ;;  %vm44_vm1 = vcmask 31744   ;;  %v1713_v5 = vmov 0.0   ;;  %s2042_s0 = inlined_call_operand.vmem [shape: f32[8,8,4], index: 0, kind: input, shape index: {}]   ;;  %s2043_s1 = inlined_call_operand.vmem [shape: f32[4,128], index: 1, kind: input, shape index: {}]   ;;  %s2044_s2 = inlined_call_operand.vmem [shape: f32[32,128], index: 2, kind: input, shape index: {}]   ;;  %s2045_s3 = inlined_call_operand.vmem [shape: f32[1,128], index: 3, kind: input, shape index: {}]   ;;  %s2046_s4 = inlined_call_operand.vmem [shape: f32[32,8], index: 4, kind: input, shape index: {}]   ;;  %s2047_s5 = inlined_call_operand.vmem [shape: f32[1,8], index: 5, kind: input, shape index: {}]   ;;  %s2048_s6 = inlined_call_operand.hbm [shape: f32[8,8,8], index: 6, kind: output, shape index: {0}]   ;;  %s2049_s7 = inlined_call_operand.hbm [shape: f32[8,32], index: 7, kind: output, shape index: {1}]   ;;  %s2050_s8 = inlined_call_operand.hbm [shape: f32[8,32], index: 8, kind: output, shape index: {2}]  }
   0x1   :  { %v36_v0 = vld [vmem:[%s2043_s1] sm:$0xf]  ;;  %v33_v2 = vld [vmem:[%s2042_s0 + $0x28] sm:$0xff]  ;;  %v1782_v3 = vld [vmem:[%s2044_s2 + $0x18] sm:$0xff] }
   0x2   :  { %v32_v1 = vld [vmem:[%s2042_s0 + $0x20] sm:$0xff]  ;;  %1541 = vmatprep.subr.msk.mxu1 %vm69_vm0, %v36_v0  ;;  %1419 = vmatprep.subr.msk.mxu0 %vm69_vm0, %v36_v0  ;;  %v29_v6 = vld [vmem:[%s2042_s0 + $0x8] sm:$0xff]  ;;  %v34_v7 = vld [vmem:[%s2042_s0 + $0x30] sm:$0xff] }
   0x3   :  { %1427 = vmatprep.mubr.msk.f32.mxu1 %vm44_vm1, %v32_v1  ;;  %1542 = vmatpush3.msk.msra.mxu1 %vm69_vm0, %v36_v0  ;;  %v28_v4 = vld [vmem:[%s2042_s0] sm:$0xff]  ;;  %v1802_v8 = vld [vmem:[%s2044_s2 + $0x10] sm:$0xff] }
   0x4   :  { %1428 = vmatmul.mubr.msk.f32.vlgmr.msra.gmra.mxu1 %vm44_vm1, %v33_v2  ;;  %1433 = vmatprep.subr.mxu1 %v1713_v5 }
   0x5   :  { %1434 = vmatpush3.msra.mxu1 %v1782_v3  ;;  %1420 = vmatpush3.msk.msra.mxu0 %vm69_vm0, %v36_v0 }
   0x6   :  { %15 = vsyncpa [#allocation7], 0  ;;  %1421 = vmatprep.mubr.msk.f32.mxu0 %vm44_vm1, %v28_v4  ;;  %1435 = vmatprep.subr.mxu1 %v1713_v5  ;;  %v35_v9 = vld [vmem:[%s2042_s0 + $0x38] sm:$0xff]  ;;  %v1814_v10 = vld [vmem:[%s2044_s2 + $0x8] sm:$0xff]  ;;  %vm1714_vm2 = vmmov 0   ;;  %s1715_s27 = smov 32  }
   0x7   :  { %1422 = vmatmul.mubr.msk.f32.vlgmr.msra.gmra.mxu0 %vm44_vm1, %v29_v6  ;;  %1430 = vmatprep.mubr.msk.f32.mxu1 %vm44_vm1, %v34_v7  ;;  %v1823_v11 = vld [vmem:[%s2044_s2] sm:$0xff]  ;;  %vm191_vm3 = vcmask 261120   ;;  %v30_v51 = vld [vmem:[%s2042_s0 + $0x10] sm:$0xff]  ;;  %v31_v52 = vld [vmem:[%s2042_s0 + $0x18] sm:$0xff]  ;;  %vm1184_vm4 = vcmask 64512   ;;  %s1718_s17 = smov [#allocation6]  }
   0x8   :  { %1436 = vmatpush3.msra.mxu1 %v1802_v8  ;;  %1455 = vmatprep.subr.mxu0 %v1713_v5  ;;  %v1859_v17 = vld [vmem:[%s2045_s3] ss:$0 sm:$0xff]  ;;  %s1716_s3 = smov 64   ;;  %s1299_s18 = sshll.u32 %s1718_s17, 4  ;;  %s1300_s18 = int_to_ptr.vmem [resolvable:$true] %s1299_s18 }
   0x9   :  { %1431 = vmatmul.mubr.msk.f32.gmra.mxu1 %vm44_vm1, %v35_v9  ;;  %1437 = vmatprep.subr.mxu1 %v1713_v5  ;;  %s1649_s19 = scalar_lea.vmem %s1300_s18, 128  ;;  %p1654_p1 = scmp.lt.s32.totalorder %s1300_s18, %s1300_s18 }
   0xa   :  { %1438 = vmatpush3.msra.mxu1 %v1814_v10  ;;  %1441 = vmatprep.mubr.msk.f32.mxu1 %vm1714_vm2, %v1713_v5  ;;  %p1650_p0 = scmp.ne.s32.totalorder %s1300_s18, %s1649_s19  ;;  %p1655_p2 = scmp.lt.s32.totalorder %s1649_s19, %s1649_s19 }
   0xb   :  { %1439 = vmatprep.subr.mxu1 %v1713_v5  ;;  %1456 = vmatpush3.msra.mxu0 %v1782_v3 }
   0xc   :  { %1440 = vmatpush3.msra.mxu1 %v1823_v11  ;;  %1457 = vmatprep.subr.mxu0 %v1713_v5  ;;  %p1656_p3 = por %p1655_p2, %p1654_p1 }
   0xd   :  { %1442 = vmatmul.mubr.f32.vlgmr.msra.gmra.mxu1 %v1713_v5  ;;  %1444 = vmatprep.subr.mxu1 %v1713_v5 }
   0xe   :  { %1445 = vmatpush3.msra.mxu1 %v1782_v3  ;;  %1452 = vmatprep.mubr.msk.f32.mxu1 %vm1714_vm2, %v1713_v5  ;;  %p1657_p4 = pnand %p1656_p3, %p1650_p0 }
   0xf   :  { %1446 = vmatprep.subr.mxu1 %v1713_v5  ;;  %1458 = vmatpush3.msra.mxu0 %v1802_v8 }
  0x10   :  { %1447 = vmatpush3.msra.mxu1 %v1802_v8  ;;  %1459 = vmatprep.subr.mxu0 %v1713_v5 }
  0x11   :  { %1448 = vmatprep.subr.mxu1 %v1713_v5  ;;  %1460 = vmatpush3.msra.mxu0 %v1814_v10 }
  0x12   :  { %1449 = vmatpush3.msra.mxu1 %v1814_v10  ;;  %1461 = vmatprep.subr.mxu0 %v1713_v5 }
  0x13   :  { %1450 = vmatprep.subr.mxu1 %v1713_v5  ;;  %1462 = vmatpush3.msra.mxu0 %v1823_v11 }
  0x14   :  { %1451 = vmatpush3.msra.mxu1 %v1823_v11  ;;  %1477 = vmatprep.subr.mxu0 %v1713_v5 }
  0x15   :  { %1466 = vmatprep.subr.mxu1 %v1713_v5  ;;  %1424 = vmatprep.mubr.msk.f32.mxu0 %vm44_vm1, %v30_v51 }
  0x16   :  { %1425 = vmatmul.mubr.msk.f32.gmra.mxu0 %vm44_vm1, %v31_v52 }
  0x17   :  { %1463 = vmatprep.mubr.msk.f32.mxu0 %vm1714_vm2, %v1713_v5 }
  0xc4   :  { %v1850_v12 = vpop.f32.mrf.mxu1 }
  0xc6   :  { %v1852_v13 = vpop.f32.mrf.mxu1 }
  0xc7   :  { %v1423_v14 = vpop.f32.mrf.mxu0 }
  0xc8   :  { %v145_v37 = vadd.f32 %v1423_v14, %v1859_v17 }
  0xc9   :  { %v1854_v15 = vpop.f32.mrf.mxu1  ;;  %v139_v16 = vpop.f32.mrf.mxu0 }
  0xca   :  { %v140_v19 = vadd.f32 %v1859_v17, %v139_v16 }
  0xcb   :  { %v1861_v18 = vpop.f32.mrf.mxu1 }
  0xcd   :  { %v261_v20 = vpop.f32.mrf.mxu1 }
  0xce   :  { %v265_v21 = vadd.f32 %v261_v20, %v140_v19 }
  0xcf   :  { %v1443_v22 = vpop.f32.mrf.mxu1 }
  0xd0   :  { %1553 = vtanh.f32 %v265_v21  ;;  %v1334_v24 = vmul.f32 -1.442695, %v265_v21 }
  0xd2   :  { %1555 = vpow2.f32 %v1334_v24 }
  0xd6   :  { %v1426_v57 = vpop.f32.mrf.mxu0 }
  0xd8   :  { %v149_v58 = vpop.f32.mrf.mxu0 }
  0xd9   :  { %v150_v59 = vadd.f32 %v1859_v17, %v149_v58  ;;  %v165_v58 = vadd.f32 %v1850_v12, %v1859_v17 }
  0xdd   :  { %v1554_v23 = vpop.eup %1553 }
  0xde   :  { %275 = vrot.lane.b32.xlu0 %v1554_v23, %s1715_s27  ;;  %v155_v23 = vadd.f32 %v1426_v57, %v1859_v17 }
  0xdf   :  { %v1556_v25 = vpop.eup %1555 }
  0xe0   :  { %v269_v26 = vadd.f32 1.0, %v1556_v25 }
  0xe2   :  { %1557 = vrcp.f32 %v269_v26 }
  0xef   :  { %v1558_v27 = vpop.eup %1557 }
  0xf0   :  { %v273_v30 = vmul.f32 0.0, %v1558_v27 }
 0x150   :  { %v276_v28 = vpop.permute.xlu0 %275 }
 0x151   :  { %v278_v29 = vmul.f32 %v1558_v27, %v276_v28 }
 0x153   :  { %280 = vrot.lane.b32.xlu0 %v278_v29, %s1715_s27 }
 0x1c5   :  { %v281_v31 = vpop.permute.xlu0 %280 }
 0x1c6   :  { %v283_v32 = vadd.f32 %v281_v31, %v273_v30 }
 0x1c8   :  { %1559 = vtanh.f32 %v283_v32 }
 0x1d5   :  { %v1560_v33 = vpop.eup %1559 }
 0x1d6   :  { %286 = vrot.lane.b32.xlu1 %v1560_v33, %s1715_s27 }
 0x248   :  { %v287_v34 = vpop.permute.xlu1 %286 }
 0x249   :  { %v289_v35 = vmul.f32 %v1558_v27, %v287_v34 }
 0x24b   :  { %291 = vrot.lane.b32.xlu1 %v289_v35, %s1716_s3 }
 0x2bd   :  { %v292_v36 = vpop.permute.xlu1 %291 }
 0x2be   :  { %294 = vst.msk [vmem:[#allocation3] sm:$0xff] %vm191_vm3, %v292_v36  ;;  %1453 = vmatmul.mubr.msk.f32.vlgmr.msra.gmra.mxu1 %vm191_vm3, %v292_v36 }
 0x2bf   :  { %1467 = vmatpush3.msra.mxu1 %v1782_v3  ;;  %1474 = vmatprep.mubr.msk.f32.mxu1 %vm1714_vm2, %v1713_v5 }
 0x2c0   :  { %1468 = vmatprep.subr.mxu1 %v1713_v5 }
 0x2c1   :  { %1469 = vmatpush3.msra.mxu1 %v1802_v8 }
 0x2c2   :  { %1470 = vmatprep.subr.mxu1 %v1713_v5 }
 0x2c3   :  { %1471 = vmatpush3.msra.mxu1 %v1814_v10 }
 0x2c4   :  { %1472 = vmatprep.subr.mxu1 %v1713_v5 }
 0x2c5   :  { %1473 = vmatpush3.msra.mxu1 %v1823_v11 }
 0x2c6   :  { %1488 = vmatprep.subr.mxu1 %v1713_v5 }
 0x37e   :  { %v365_v38 = vpop.f32.mrf.mxu1 }
 0x37f   :  { %v369_v39 = vadd.f32 %v365_v38, %v145_v37 }
 0x380   :  { %v1454_v40 = vpop.f32.mrf.mxu1 }
 0x381   :  { %1561 = vtanh.f32 %v369_v39  ;;  %v1336_v42 = vmul.f32 -1.442695, %v369_v39 }
 0x383   :  { %1563 = vpow2.f32 %v1336_v42 }
 0x38e   :  { %v1562_v41 = vpop.eup %1561 }
 0x38f   :  { %379 = vrot.lane.b32.xlu0 %v1562_v41, %s1715_s27  ;;  %v160_v41 = vadd.f32 %v1859_v17, %v1852_v13 }
 0x390   :  { %v1564_v43 = vpop.eup %1563 }
 0x391   :  { %v373_v44 = vadd.f32 1.0, %v1564_v43 }
 0x393   :  { %1565 = vrcp.f32 %v373_v44 }
 0x3a0   :  { %v1566_v45 = vpop.eup %1565 }
 0x3a1   :  { %v377_v48 = vmul.f32 %v1566_v45, %v283_v32 }
 0x401   :  { %v380_v46 = vpop.permute.xlu0 %379 }
 0x402   :  { %v382_v47 = vmul.f32 %v1566_v45, %v380_v46 }
 0x404   :  { %384 = vrot.lane.b32.xlu1 %v382_v47, %s1715_s27 }
 0x476   :  { %v385_v49 = vpop.permute.xlu1 %384 }
 0x477   :  { %v387_v50 = vadd.f32 %v385_v49, %v377_v48 }
 0x479   :  { %1567 = vtanh.f32 %v387_v50 }
 0x486   :  { %v1568_v53 = vpop.eup %1567 }
 0x487   :  { %390 = vrot.lane.b32.xlu0 %v1568_v53, %s1715_s27 }
 0x4f9   :  { %v391_v54 = vpop.permute.xlu0 %390 }
 0x4fa   :  { %v393_v55 = vmul.f32 %v1566_v45, %v391_v54 }
 0x4fc   :  { %395 = vrot.lane.b32.xlu1 %v393_v55, %s1716_s3 }
 0x56e   :  { %v396_v56 = vpop.permute.xlu1 %395 }
 0x56f   :  { %399 = vst.msk [vmem:[#allocation3 + $0x8] sm:$0xff] %vm191_vm3, %v396_v56  ;;  %1464 = vmatmul.mubr.msk.f32.vlgmr.msra.gmra.mxu0 %vm191_vm3, %v396_v56 }
 0x570   :  { %1478 = vmatpush3.msra.mxu0 %v1782_v3  ;;  %1485 = vmatprep.mubr.msk.f32.mxu0 %vm1714_vm2, %v1713_v5 }
 0x571   :  { %1479 = vmatprep.subr.mxu0 %v1713_v5 }
 0x572   :  { %1480 = vmatpush3.msra.mxu0 %v1802_v8 }
 0x573   :  { %1481 = vmatprep.subr.mxu0 %v1713_v5 }
 0x574   :  { %1482 = vmatpush3.msra.mxu0 %v1814_v10 }
 0x575   :  { %1483 = vmatprep.subr.mxu0 %v1713_v5 }
 0x576   :  { %1484 = vmatpush3.msra.mxu0 %v1823_v11 }
 0x577   :  { %1499 = vmatprep.subr.mxu0 %v1713_v5 }
 0x62f   :  { %v470_v60 = vpop.f32.mrf.mxu0 }
 0x630   :  { %v474_v61 = vadd.f32 %v470_v60, %v150_v59 }
 0x631   :  { %v1465_v62 = vpop.f32.mrf.mxu0 }
 0x632   :  { %1569 = vtanh.f32 %v474_v61  ;;  %v1338_v0 = vmul.f32 -1.442695, %v474_v61 }
 0x634   :  { %1571 = vpow2.f32 %v1338_v0 }
 0x63f   :  { %v1570_v63 = vpop.eup %1569 }
 0x640   :  { %484 = vrot.lane.b32.xlu0 %v1570_v63, %s1715_s27 }
 0x641   :  { %v1572_v1 = vpop.eup %1571 }
 0x642   :  { %v478_v2 = vadd.f32 1.0, %v1572_v1 }
 0x644   :  { %1573 = vrcp.f32 %v478_v2  ;;  %v1047_v2 = vld [vmem:[%s2046_s4 + $0x18] sm:$0xff] }
 0x651   :  { %v1574_v4 = vpop.eup %1573 }
 0x652   :  { %v482_v9 = vmul.f32 %v1574_v4, %v387_v50 }
 0x6b2   :  { %v485_v6 = vpop.permute.xlu0 %484 }
 0x6b3   :  { %v487_v7 = vmul.f32 %v1574_v4, %v485_v6 }
 0x6b5   :  { %489 = vrot.lane.b32.xlu1 %v487_v7, %s1715_s27 }
 0x727   :  { %v490_v14 = vpop.permute.xlu1 %489 }
 0x728   :  { %v492_v16 = vadd.f32 %v490_v14, %v482_v9  ;;  %v1046_v14 = vld [vmem:[%s2046_s4 + $0x10] sm:$0xff] }
 0x72a   :  { %1575 = vtanh.f32 %v492_v16 }
 0x737   :  { %v1576_v19 = vpop.eup %1575 }
 0x738   :  { %495 = vrot.lane.b32.xlu0 %v1576_v19, %s1715_s27  ;;  %v1045_v19 = vld [vmem:[%s2046_s4 + $0x8] sm:$0xff] }
 0x7aa   :  { %v496_v20 = vpop.permute.xlu0 %495 }
 0x7ab   :  { %v498_v21 = vmul.f32 %v1574_v4, %v496_v20  ;;  %v1044_v20 = vld [vmem:[%s2046_s4] sm:$0xff] }
 0x7ad   :  { %500 = vrot.lane.b32.xlu1 %v498_v21, %s1716_s3  ;;  %v1037_v21 = vld [vmem:[#allocation3 + $0x8] sm:$0xff] }
 0x81f   :  { %v501_v22 = vpop.permute.xlu1 %500 }
 0x820   :  { %504 = vst.msk [vmem:[#allocation3 + $0x10] sm:$0xff] %vm191_vm3, %v501_v22  ;;  %1475 = vmatmul.mubr.msk.f32.vlgmr.msra.gmra.mxu1 %vm191_vm3, %v501_v22 }
 0x821   :  { %1489 = vmatpush3.msra.mxu1 %v1782_v3  ;;  %1496 = vmatprep.mubr.msk.f32.mxu1 %vm1714_vm2, %v1713_v5 }
 0x822   :  { %1490 = vmatprep.subr.mxu1 %v1713_v5 }
 0x823   :  { %1491 = vmatpush3.msra.mxu1 %v1802_v8 }
 0x824   :  { %1492 = vmatprep.subr.mxu1 %v1713_v5 }
 0x825   :  { %1493 = vmatpush3.msra.mxu1 %v1814_v10 }
 0x826   :  { %1494 = vmatprep.subr.mxu1 %v1713_v5 }
 0x827   :  { %1495 = vmatpush3.msra.mxu1 %v1823_v11  ;;  %v1038_v22 = vld [vmem:[#allocation3 + $0x10] sm:$0xff] }
 0x828   :  { %1510 = vmatprep.subr.mxu1 %v1713_v5 }
 0x8e0   :  { %v575_v24 = vpop.f32.mrf.mxu1 }
 0x8e1   :  { %v579_v25 = vadd.f32 %v575_v24, %v155_v23 }
 0x8e2   :  { %v1476_v26 = vpop.f32.mrf.mxu1 }
 0x8e3   :  { %1577 = vtanh.f32 %v579_v25  ;;  %v1340_v28 = vmul.f32 -1.442695, %v579_v25  ;;  %v170_v26 = vadd.f32 %v1859_v17, %v1861_v18 }
 0x8e5   :  { %1579 = vpow2.f32 %v1340_v28 }
 0x8f0   :  { %v1578_v27 = vpop.eup %1577 }
 0x8f1   :  { %589 = vrot.lane.b32.xlu0 %v1578_v27, %s1715_s27 }
 0x8f2   :  { %v1580_v29 = vpop.eup %1579 }
 0x8f3   :  { %v583_v30 = vadd.f32 1.0, %v1580_v29 }
 0x8f5   :  { %1581 = vrcp.f32 %v583_v30 }
 0x902   :  { %v1582_v31 = vpop.eup %1581 }
 0x903   :  { %v587_v34 = vmul.f32 %v1582_v31, %v492_v16  ;;  %v1036_v16 = vld [vmem:[#allocation3] sm:$0xff] }
 0x963   :  { %v590_v32 = vpop.permute.xlu0 %589 }
 0x964   :  { %v592_v33 = vmul.f32 %v1582_v31, %v590_v32 }
 0x966   :  { %594 = vrot.lane.b32.xlu1 %v592_v33, %s1715_s27 }
 0x9d8   :  { %v595_v35 = vpop.permute.xlu1 %594 }
 0x9d9   :  { %v597_v36 = vadd.f32 %v595_v35, %v587_v34 }
 0x9db   :  { %1583 = vtanh.f32 %v597_v36 }
 0x9e8   :  { %v1584_v37 = vpop.eup %1583 }
 0x9e9   :  { %600 = vrot.lane.b32.xlu0 %v1584_v37, %s1715_s27 }
 0xa5b   :  { %v601_v38 = vpop.permute.xlu0 %600 }
 0xa5c   :  { %v603_v39 = vmul.f32 %v1582_v31, %v601_v38 }
 0xa5e   :  { %605 = vrot.lane.b32.xlu1 %v603_v39, %s1716_s3 }
 0xad0   :  { %v606_v40 = vpop.permute.xlu1 %605 }
 0xad1   :  { %609 = vst.msk [vmem:[#allocation3 + $0x18] sm:$0xff] %vm191_vm3, %v606_v40  ;;  %1486 = vmatmul.mubr.msk.f32.vlgmr.msra.gmra.mxu0 %vm191_vm3, %v606_v40 }
 0xad2   :  { %1500 = vmatpush3.msra.mxu0 %v1782_v3  ;;  %1507 = vmatprep.mubr.msk.f32.mxu0 %vm1714_vm2, %v1713_v5 }
 0xad3   :  { %1501 = vmatprep.subr.mxu0 %v1713_v5 }
 0xad4   :  { %1502 = vmatpush3.msra.mxu0 %v1802_v8 }
 0xad5   :  { %1503 = vmatprep.subr.mxu0 %v1713_v5 }
 0xad6   :  { %1504 = vmatpush3.msra.mxu0 %v1814_v10 }
 0xad7   :  { %1505 = vmatprep.subr.mxu0 %v1713_v5 }
 0xad8   :  { %1506 = vmatpush3.msra.mxu0 %v1823_v11  ;;  %v1039_v23 = vld [vmem:[#allocation3 + $0x18] sm:$0xff] }
 0xad9   :  { %1521 = vmatprep.subr.mxu0 %v1047_v2 }
 0xb91   :  { %v680_v42 = vpop.f32.mrf.mxu0 }
 0xb92   :  { %v684_v43 = vadd.f32 %v680_v42, %v160_v41 }
 0xb93   :  { %v1487_v44 = vpop.f32.mrf.mxu0 }
 0xb94   :  { %1585 = vtanh.f32 %v684_v43  ;;  %v1342_v46 = vmul.f32 -1.442695, %v684_v43  ;;  %v175_v44 = vadd.f32 %v1854_v15, %v1859_v17 }
 0xb96   :  { %1587 = vpow2.f32 %v1342_v46 }
 0xba1   :  { %v1586_v45 = vpop.eup %1585 }
 0xba2   :  { %694 = vrot.lane.b32.xlu0 %v1586_v45, %s1715_s27 }
 0xba3   :  { %v1588_v47 = vpop.eup %1587 }
 0xba4   :  { %v688_v48 = vadd.f32 1.0, %v1588_v47 }
 0xba6   :  { %1589 = vrcp.f32 %v688_v48 }
 0xbb3   :  { %v1590_v49 = vpop.eup %1589 }
 0xbb4   :  { %v692_v52 = vmul.f32 %v1590_v49, %v597_v36 }
 0xc14   :  { %v695_v50 = vpop.permute.xlu0 %694 }
 0xc15   :  { %v697_v51 = vmul.f32 %v1590_v49, %v695_v50 }
 0xc17   :  { %699 = vrot.lane.b32.xlu1 %v697_v51, %s1715_s27 }
 0xc89   :  { %v700_v53 = vpop.permute.xlu1 %699 }
 0xc8a   :  { %v702_v13 = vadd.f32 %v700_v53, %v692_v52 }
 0xc8c   :  { %1591 = vtanh.f32 %v702_v13 }
 0xc99   :  { %v1592_v54 = vpop.eup %1591 }
 0xc9a   :  { %705 = vrot.lane.b32.xlu0 %v1592_v54, %s1715_s27 }
 0xd0c   :  { %v706_v55 = vpop.permute.xlu0 %705 }
 0xd0d   :  { %v708_v56 = vmul.f32 %v1590_v49, %v706_v55 }
 0xd0f   :  { %710 = vrot.lane.b32.xlu1 %v708_v56, %s1716_s3 }
 0xd81   :  { %v711_v57 = vpop.permute.xlu1 %710 }
 0xd82   :  { %714 = vst.msk [vmem:[#allocation3 + $0x20] sm:$0xff] %vm191_vm3, %v711_v57  ;;  %1497 = vmatmul.mubr.msk.f32.vlgmr.msra.gmra.mxu1 %vm191_vm3, %v711_v57 }
 0xd83   :  { %1511 = vmatpush3.msra.mxu1 %v1782_v3  ;;  %1518 = vmatprep.mubr.msk.f32.mxu1 %vm1714_vm2, %v1713_v5 }
 0xd84   :  { %1512 = vmatprep.subr.mxu1 %v1713_v5 }
 0xd85   :  { %1513 = vmatpush3.msra.mxu1 %v1802_v8 }
 0xd86   :  { %1514 = vmatprep.subr.mxu1 %v1713_v5 }
 0xd87   :  { %1515 = vmatpush3.msra.mxu1 %v1814_v10 }
 0xd88   :  { %1516 = vmatprep.subr.mxu1 %v1713_v5 }
 0xd89   :  { %1517 = vmatpush3.msra.mxu1 %v1823_v11  ;;  %v1040_v24 = vld [vmem:[#allocation3 + $0x20] sm:$0xff] }
 0xe42   :  { %v785_v59 = vpop.f32.mrf.mxu1 }
 0xe43   :  { %v789_v3 = vadd.f32 %v785_v59, %v165_v58  ;;  %v1349_v59 = vld [vmem:[%s2047_s5] ss:$0 sm:$0xff]  ;;  %s1717_s5 = smov 96  }
 0xe44   :  { %v1498_v60 = vpop.f32.mrf.mxu1 }
 0xe45   :  { %1593 = vtanh.f32 %v789_v3  ;;  %v1344_v62 = vmul.f32 -1.442695, %v789_v3 }
 0xe47   :  { %1595 = vpow2.f32 %v1344_v62 }
 0xe52   :  { %v1594_v61 = vpop.eup %1593 }
 0xe53   :  { %799 = vrot.lane.b32.xlu0 %v1594_v61, %s1715_s27 }
 0xe54   :  { %v1596_v8 = vpop.eup %1595 }
 0xe55   :  { %v793_v63 = vadd.f32 1.0, %v1596_v8 }
 0xe57   :  { %1597 = vrcp.f32 %v793_v63 }
 0xe64   :  { %v1598_v10 = vpop.eup %1597 }
 0xe65   :  { %v797_v11 = vmul.f32 %v1598_v10, %v702_v13 }
 0xec5   :  { %v800_v0 = vpop.permute.xlu0 %799 }
 0xec6   :  { %v802_v5 = vmul.f32 %v1598_v10, %v800_v0 }
 0xec8   :  { %804 = vrot.lane.b32.xlu1 %v802_v5, %s1715_s27 }
 0xf3a   :  { %v805_v1 = vpop.permute.xlu1 %804 }
 0xf3b   :  { %v807_v12 = vadd.f32 %v805_v1, %v797_v11 }
 0xf3d   :  { %1599 = vtanh.f32 %v807_v12 }
 0xf4a   :  { %v1600_v4 = vpop.eup %1599 }
 0xf4b   :  { %810 = vrot.lane.b32.xlu0 %v1600_v4, %s1715_s27 }
 0xfbd   :  { %v811_v6 = vpop.permute.xlu0 %810 }
 0xfbe   :  { %v813_v7 = vmul.f32 %v1598_v10, %v811_v6 }
 0xfc0   :  { %815 = vrot.lane.b32.xlu1 %v813_v7, %s1716_s3 }
0x1032   :  { %v816_v9 = vpop.permute.xlu1 %815 }
0x1033   :  { %819 = vst.msk [vmem:[#allocation3 + $0x28] sm:$0xff] %vm191_vm3, %v816_v9  ;;  %1508 = vmatmul.mubr.msk.f32.vlgmr.msra.gmra.mxu0 %vm191_vm3, %v816_v9 }
0x1034   :  { %1522 = vmatpush3.msra.mxu0 %v1047_v2  ;;  %1529 = vmatprep.mubr.msk.f32.mxu0 %vm191_vm3, %v1036_v16 }
0x1035   :  { %1523 = vmatprep.subr.mxu0 %v1046_v14 }
0x1036   :  { %1524 = vmatpush3.msra.mxu0 %v1046_v14 }
0x1037   :  { %1525 = vmatprep.subr.mxu0 %v1045_v19 }
0x1038   :  { %1526 = vmatpush3.msra.mxu0 %v1045_v19 }
0x1039   :  { %1527 = vmatprep.subr.mxu0 %v1044_v20 }
0x103a   :  { %1528 = vmatpush3.msra.mxu0 %v1044_v20  ;;  %v1041_v25 = vld [vmem:[#allocation3 + $0x28] sm:$0xff] }
0x103b   :  { %1530 = vmatmul.mubr.msk.f32.vlgmr.msra.gmra.mxu0 %vm191_vm3, %v1037_v21 }
0x103c   :  { %1532 = vmatprep.mubr.msk.f32.mxu0 %vm191_vm3, %v1038_v22 }
0x103f   :  { %1533 = vmatmul.mubr.msk.f32.gmra.mxu0 %vm191_vm3, %v1039_v23 }
0x1040   :  { %1535 = vmatprep.mubr.msk.f32.mxu0 %vm191_vm3, %v1040_v24 }
0x1043   :  { %1536 = vmatmul.mubr.msk.f32.gmra.mxu0 %vm191_vm3, %v1041_v25 }
0x10f3   :  { %v890_v27 = vpop.f32.mrf.mxu0 }
0x10f4   :  { %v894_v28 = vadd.f32 %v890_v27, %v170_v26 }
0x10f5   :  { %v1509_v29 = vpop.f32.mrf.mxu0 }
0x10f6   :  { %1601 = vtanh.f32 %v894_v28  ;;  %v1346_v31 = vmul.f32 -1.442695, %v894_v28 }
0x10f8   :  { %1603 = vpow2.f32 %v1346_v31 }
0x10fb   :  { %v1531_v56 = vpop.f32.mrf.mxu0 }
0x10fc   :  { %v1151_v2 = vadd.f32 %v1531_v56, %v1349_v59 }
0x10fd   :  { %v1145_v57 = vpop.f32.mrf.mxu0 }
0x10fe   :  { %v1146_v3 = vadd.f32 %v1349_v59, %v1145_v57  ;;  %v1188_v7 = vsel %vm1184_vm4, %v1151_v2, -inf }
0x10ff   :  { %v1534_v58 = vpop.f32.mrf.mxu0 }
0x1100   :  { %v1185_v62 = vsel %vm1184_vm4, %v1146_v3, -inf  ;;  %v1161_v8 = vadd.f32 %v1534_v58, %v1349_v59 }
0x1101   :  { %v1155_v60 = vpop.f32.mrf.mxu0 }
0x1102   :  { %v1156_v61 = vadd.f32 %v1349_v59, %v1155_v60  ;;  %v1194_v5 = vsel %vm1184_vm4, %v1161_v8, -inf }
0x1103   :  { %v1602_v30 = vpop.eup %1601  ;;  %v1537_v10 = vpop.f32.mrf.mxu0 }
0x1104   :  { %904 = vrot.lane.b32.xlu0 %v1602_v30, %s1715_s27  ;;  %v1191_v63 = vsel %vm1184_vm4, %v1156_v61, -inf  ;;  %v1171_v0 = vadd.f32 %v1537_v10, %v1349_v59 }
0x1105   :  { %v1604_v32 = vpop.eup %1603  ;;  %v1165_v4 = vpop.f32.mrf.mxu0 }
0x1106   :  { %v898_v33 = vadd.f32 1.0, %v1604_v32  ;;  %v1200_v11 = vsel %vm1184_vm4, %v1171_v0, -inf  ;;  %v1166_v6 = vadd.f32 %v1349_v59, %v1165_v4 }
0x1108   :  { %1605 = vrcp.f32 %v898_v33  ;;  %v1197_v9 = vsel %vm1184_vm4, %v1166_v6, -inf }
0x1115   :  { %v1606_v34 = vpop.eup %1605 }
0x1116   :  { %v902_v37 = vmul.f32 %v1606_v34, %v807_v12 }
0x1176   :  { %v905_v35 = vpop.permute.xlu0 %904 }
0x1177   :  { %v907_v36 = vmul.f32 %v1606_v34, %v905_v35 }
0x1179   :  { %909 = vrot.lane.b32.xlu1 %v907_v36, %s1715_s27 }
0x11eb   :  { %v910_v38 = vpop.permute.xlu1 %909 }
0x11ec   :  { %v912_v18 = vadd.f32 %v910_v38, %v902_v37 }
0x11ee   :  { %1607 = vtanh.f32 %v912_v18 }
0x11fb   :  { %v1608_v39 = vpop.eup %1607 }
0x11fc   :  { %915 = vrot.lane.b32.xlu0 %v1608_v39, %s1715_s27 }
0x126e   :  { %v916_v40 = vpop.permute.xlu0 %915 }
0x126f   :  { %v918_v41 = vmul.f32 %v1606_v34, %v916_v40 }
0x1271   :  { %920 = vrot.lane.b32.xlu1 %v918_v41, %s1716_s3 }
0x12e3   :  { %v921_v42 = vpop.permute.xlu1 %920 }
0x12e4   :  { %924 = vst.msk [vmem:[#allocation3 + $0x30] sm:$0xff] %vm191_vm3, %v921_v42  ;;  %1519 = vmatmul.mubr.msk.f32.vlgmr.msra.gmra.mxu1 %vm191_vm3, %v921_v42 }
0x12eb   :  { %v1042_v43 = vld [vmem:[#allocation3 + $0x30] sm:$0xff] }
0x12ec   :  { %1538 = vmatprep.mubr.msk.f32.mxu0 %vm191_vm3, %v1042_v43 }
0x13a4   :  { %v995_v45 = vpop.f32.mrf.mxu1 }
0x13a5   :  { %v999_v46 = vadd.f32 %v995_v45, %v175_v44 }
0x13a6   :  { %v1520_v47 = vpop.f32.mrf.mxu1 }
0x13a7   :  { %1609 = vtanh.f32 %v999_v46  ;;  %v1348_v49 = vmul.f32 -1.442695, %v999_v46 }
0x13a9   :  { %1611 = vpow2.f32 %v1348_v49 }
0x13b4   :  { %v1610_v48 = vpop.eup %1609 }
0x13b5   :  { %1009 = vrot.lane.b32.xlu0 %v1610_v48, %s1715_s27 }
0x13b6   :  { %v1612_v50 = vpop.eup %1611 }
0x13b7   :  { %v1003_v51 = vadd.f32 1.0, %v1612_v50 }
0x13b9   :  { %1613 = vrcp.f32 %v1003_v51 }
0x13c6   :  { %v1614_v52 = vpop.eup %1613 }
0x13c7   :  { %v1007_v54 = vmul.f32 %v1614_v52, %v912_v18 }
0x1427   :  { %v1010_v53 = vpop.permute.xlu0 %1009 }
0x1428   :  { %v1012_v13 = vmul.f32 %v1614_v52, %v1010_v53 }
0x142a   :  { %1014 = vrot.lane.b32.xlu1 %v1012_v13, %s1715_s27 }
0x149c   :  { %v1015_v55 = vpop.permute.xlu1 %1014 }
0x149d   :  { %v1996_v15 = vadd.f32 %v1015_v55, %v1007_v54 }
0x149f   :  { %1615 = vtanh.f32 %v1996_v15 }
0x14ac   :  { %v1616_v17 = vpop.eup %1615 }
0x14ad   :  { %1020 = vrot.lane.b32.xlu0 %v1616_v17, %s1715_s27 }
0x14cc   :  { %1186 = vmax.xlane.f32.xlu0 %v1185_v62 }
0x14d0   :  { %1192 = vmax.xlane.f32.xlu0 %v1191_v63 }
0x14d4   :  { %1195 = vmax.xlane.f32.xlu0 %v1194_v5 }
0x14d8   :  { %1201 = vmax.xlane.f32.xlu0 %v1200_v11 }
0x151f   :  { %v1021_v1 = vpop.permute.xlu0 %1020 }
0x1520   :  { %v1023_v12 = vmul.f32 %v1614_v52, %v1021_v1 }
0x1522   :  { %1025 = vrot.lane.b32.xlu1 %v1023_v12, %s1716_s3 }
0x1546   :  { %1189 = vmax.xlane.f32.xlu1 %v1188_v7 }
0x154a   :  { %1198 = vmax.xlane.f32.xlu1 %v1197_v9 }
0x1555   :  { %v1187_v19 = vpop.xlane.xlu0 %1186 }
0x1556   :  { %v1209_v24 = vsub.f32 %v1146_v3, %v1187_v19 }
0x1558   :  { %v1217_v28 = vmul.f32 1.442695, %v1209_v24 }
0x1559   :  { %v1193_v20 = vpop.xlane.xlu0 %1192 }
0x155a   :  { %v1211_v29 = vsub.f32 %v1156_v61, %v1193_v20 }
0x155c   :  { %v1221_v33 = vmul.f32 1.442695, %v1211_v29 }
0x155d   :  { %v1196_v22 = vpop.xlane.xlu0 %1195 }
0x155e   :  { %v1212_v25 = vsub.f32 %v1161_v8, %v1196_v22 }
0x1560   :  { %v1223_v31 = vmul.f32 1.442695, %v1212_v25 }
0x1561   :  { %v1202_v27 = vpop.xlane.xlu0 %1201 }
0x1562   :  { %v1214_v32 = vsub.f32 %v1171_v0, %v1202_v27 }
0x1564   :  { %v1227_v35 = vmul.f32 1.442695, %v1214_v32 }
0x1594   :  { %v1026_v14 = vpop.permute.xlu1 %1025 }
0x1595   :  { %1029 = vst.msk [vmem:[#allocation3 + $0x38] sm:$0xff] %vm191_vm3, %v1026_v14  ;;  %1030 = vst.msk [vmem:[#allocation6] sm:$0xff] %vm191_vm3, %v1026_v14 }
0x159c   :  { %v1043_v16 = vld [vmem:[#allocation3 + $0x38] sm:$0xff] }
0x159d   :  { %1539 = vmatmul.mubr.msk.f32.gmra.mxu0 %vm191_vm3, %v1043_v16 }
0x15cf   :  { %v1190_v21 = vpop.xlane.xlu1 %1189 }
0x15d0   :  { %v1210_v23 = vsub.f32 %v1151_v2, %v1190_v21 }
0x15d2   :  { %v1219_v26 = vmul.f32 1.442695, %v1210_v23 }
0x15d3   :  { %v1199_v30 = vpop.xlane.xlu1 %1198 }
0x15d4   :  { %1617 = vpow2.f32 %v1219_v26  ;;  %v1213_v34 = vsub.f32 %v1166_v6, %v1199_v30 }
0x15d5   :  { %1619 = vpow2.f32 %v1217_v28 }
0x15d6   :  { %1621 = vpow2.f32 %v1223_v31  ;;  %v1225_v36 = vmul.f32 1.442695, %v1213_v34 }
0x15d7   :  { %1623 = vpow2.f32 %v1221_v33 }
0x15d8   :  { %1625 = vpow2.f32 %v1227_v35 }
0x15d9   :  { %1627 = vpow2.f32 %v1225_v36 }
0x15e1   :  { %v1618_v41 = vpop.eup %1617 }
0x15e2   :  { %v1620_v43 = vpop.eup %1619  ;;  %v1236_v44 = vsel %vm1184_vm4, %v1618_v41, 0.0 }
0x15e3   :  { %v1622_v45 = vpop.eup %1621  ;;  %v1233_v46 = vsel %vm1184_vm4, %v1620_v43, 0.0 }
0x15e4   :  { %v1624_v47 = vpop.eup %1623  ;;  %v1242_v48 = vsel %vm1184_vm4, %v1622_v45, 0.0 }
0x15e5   :  { %v1626_v49 = vpop.eup %1625  ;;  %v1239_v50 = vsel %vm1184_vm4, %v1624_v47, 0.0 }
0x15e6   :  { %v1628_v51 = vpop.eup %1627  ;;  %v1248_v52 = vsel %vm1184_vm4, %v1626_v49, 0.0 }
0x15e7   :  { %v1245_v53 = vsel %vm1184_vm4, %v1628_v51, 0.0 }
0x165d   :  { %v1540_v37 = vpop.f32.mrf.mxu0 }
0x165e   :  { %v1181_v38 = vadd.f32 %v1540_v37, %v1349_v59 }
0x165f   :  { %v1175_v18 = vpop.f32.mrf.mxu0 }
0x1660   :  { %v1176_v39 = vadd.f32 %v1349_v59, %v1175_v18  ;;  %v1206_v40 = vsel %vm1184_vm4, %v1181_v38, -inf }
0x1661   :  { %1207 = vmax.xlane.f32.xlu0 %v1206_v40 }
0x1662   :  { %v1203_v42 = vsel %vm1184_vm4, %v1176_v39, -inf }
0x1663   :  { %1204 = vmax.xlane.f32.xlu1 %v1203_v42 }
0x1665   :  { %1237 = vadd.xlane.f32.xlu0 %v1236_v44 }
0x1667   :  { %1234 = vadd.xlane.f32.xlu1 %v1233_v46 }
0x1669   :  { %1243 = vadd.xlane.f32.xlu0 %v1242_v48 }
0x166b   :  { %1240 = vadd.xlane.f32.xlu1 %v1239_v50 }
0x166d   :  { %1249 = vadd.xlane.f32.xlu0 %v1248_v52 }
0x166f   :  { %1246 = vadd.xlane.f32.xlu1 %v1245_v53 }
0x16ea   :  { %v1208_v13 = vpop.xlane.xlu0 %1207 }
0x16eb   :  { %v1216_v54 = vsub.f32 %v1181_v38, %v1208_v13 }
0x16ec   :  { %v1205_v55 = vpop.xlane.xlu1 %1204 }
0x16ed   :  { %v1231_v17 = vmul.f32 1.442695, %v1216_v54  ;;  %v1215_v56 = vsub.f32 %v1176_v39, %v1205_v55 }
0x16ee   :  { %v1238_v57 = vpop.xlane.xlu0 %1237 }
0x16ef   :  { %1629 = vpow2.f32 %v1231_v17  ;;  %v1229_v58 = vmul.f32 1.442695, %v1215_v56 }
0x16f0   :  { %1631 = vrcp.f32 %v1238_v57  ;;  %v1235_v59 = vpop.xlane.xlu1 %1234 }
0x16f1   :  { %1633 = vpow2.f32 %v1229_v58 }
0x16f2   :  { %1635 = vrcp.f32 %v1235_v59  ;;  %v1244_v3 = vpop.xlane.xlu0 %1243 }
0x16f3   :  { %1637 = vrcp.f32 %v1244_v3 }
0x16f4   :  { %v1241_v60 = vpop.xlane.xlu1 %1240 }
0x16f5   :  { %1639 = vrcp.f32 %v1241_v60 }
0x16f6   :  { %v1250_v61 = vpop.xlane.xlu0 %1249 }
0x16f7   :  { %1641 = vrcp.f32 %v1250_v61 }
0x16f8   :  { %v1247_v62 = vpop.xlane.xlu1 %1246 }
0x16f9   :  { %1643 = vrcp.f32 %v1247_v62 }
0x16fc   :  { %v1630_v8 = vpop.eup %1629 }
0x16fd   :  { %v1632_v63 = vpop.eup %1631  ;;  %v1254_v10 = vsel %vm1184_vm4, %v1630_v8, 0.0 }
0x16fe   :  { %v1634_v0 = vpop.eup %1633  ;;  %v1260_v5 = vmul.f32 %v1632_v63, %v1618_v41  ;;  %1255 = vadd.xlane.f32.xlu0 %v1254_v10 }
0x16ff   :  { %v1636_v11 = vpop.eup %1635  ;;  %v1251_v1 = vsel %vm1184_vm4, %v1634_v0, 0.0 }
0x1700   :  { %v1638_v12 = vpop.eup %1637  ;;  %1274 = vst.msk [vmem:[#allocation4 + $0x8] sm:$0xff] %vm1184_vm4, %v1260_v5  ;;  %v1258_v2 = vmul.f32 %v1636_v11, %v1620_v43  ;;  %1252 = vadd.xlane.f32.xlu1 %v1251_v1 }
0x1701   :  { %v1264_v4 = vmul.f32 %v1638_v12, %v1622_v45 }
0x1702   :  { %v1640_v6 = vpop.eup %1639  ;;  %1273 = vst.msk [vmem:[#allocation4] sm:$0xff] %vm1184_vm4, %v1258_v2 }
0x1703   :  { %1276 = vst.msk [vmem:[#allocation4 + $0x18] sm:$0xff] %vm1184_vm4, %v1264_v4  ;;  %v1262_v7 = vmul.f32 %v1640_v6, %v1624_v47 }
0x1704   :  { %v1642_v9 = vpop.eup %1641 }
0x1705   :  { %1275 = vst.msk [vmem:[#allocation4 + $0x10] sm:$0xff] %vm1184_vm4, %v1262_v7  ;;  %v1268_v14 = vmul.f32 %v1642_v9, %v1626_v49 }
0x1706   :  { %v1644_v16 = vpop.eup %1643 }
0x1707   :  { %1278 = vst.msk [vmem:[#allocation4 + $0x28] sm:$0xff] %vm1184_vm4, %v1268_v14  ;;  %v1266_v19 = vmul.f32 %v1644_v16, %v1628_v51 }
0x1709   :  { %1277 = vst.msk [vmem:[#allocation4 + $0x20] sm:$0xff] %vm1184_vm4, %v1266_v19 }
0x1711   :  { %1032 = vrot.lane.b32.xlu1 %v1996_v15, %s1717_s5 }
0x1712   :  { %1660 = shalt.err (!%p1657_p4)
}
0x1713   :  { %1302 = dma.vmem_to_hbm [thread:$0]  %s1300_s18, 128, %s2049_s7, [#allocation7]  }
0x1714   :  { %s1719_s22 = smov [#allocation8]  }
0x1715   :  { %s1309_s23 = sshll.u32 %s1719_s22, 4  ;;  %s1310_s23 = int_to_ptr.vmem [resolvable:$true] %s1309_s23 }
0x1716   :  { %s1669_s24 = scalar_lea.vmem %s1310_s23, 128  ;;  %p1674_p6 = scmp.lt.s32.totalorder %s1310_s23, %s1310_s23 }
0x1717   :  { %p1670_p5 = scmp.ne.s32.totalorder %s1310_s23, %s1669_s24  ;;  %p1675_p7 = scmp.lt.s32.totalorder %s1669_s24, %s1669_s24 }
0x1719   :  { %p1676_p8 = por %p1675_p7, %p1674_p6 }
0x171b   :  { %p1677_p9 = pnand %p1676_p8, %p1670_p5 }
0x1787   :  { %v1256_v20 = vpop.xlane.xlu0 %1255 }
0x1788   :  { %1645 = vrcp.f32 %v1256_v20 }
0x1789   :  { %v1253_v21 = vpop.xlane.xlu1 %1252 }
0x178a   :  { %1647 = vrcp.f32 %v1253_v21 }
0x178d   :  { %v1033_v15 = vpop.permute.xlu1 %1032 }
0x178e   :  { %1035 = vst.msk [vmem:[#allocation8] sm:$0xff] %vm191_vm3, %v1033_v15 }
0x178f   :  { %1680 = shalt.err (!%p1677_p9)
}
0x1790   :  { %1312 = dma.vmem_to_hbm [thread:$0]  %s1310_s23, 128, %s2050_s8, [#allocation7]  }
0x1791   :  { %s1720_s7 = smov [#allocation4]  }
0x1792   :  { %s1286_s26 = sshll.u32 %s1720_s7, 4  ;;  %s1287_s26 = int_to_ptr.vmem [resolvable:$true] %s1286_s26 }
0x1793   :  { %s1689_s27 = scalar_lea.vmem %s1287_s26, 1024  ;;  %p1694_p11 = scmp.lt.s32.totalorder %s1287_s26, %s1287_s26 }
0x1794   :  { %p1690_p10 = scmp.ne.s32.totalorder %s1287_s26, %s1689_s27  ;;  %p1695_p12 = scmp.lt.s32.totalorder %s1689_s27, %s1689_s27 }
0x1795   :  { %v1646_v22 = vpop.eup %1645 }
0x1796   :  { %v1272_v23 = vmul.f32 %v1646_v22, %v1630_v8  ;;  %p1696_p13 = por %p1695_p12, %p1694_p11 }
0x1797   :  { %v1648_v24 = vpop.eup %1647 }
0x1798   :  { %1280 = vst.msk [vmem:[#allocation4 + $0x38] sm:$0xff] %vm1184_vm4, %v1272_v23  ;;  %v1270_v25 = vmul.f32 %v1648_v24, %v1634_v0  ;;  %p1697_p0 = pnand %p1696_p13, %p1690_p10 }
0x179a   :  { %1279 = vst.msk [vmem:[#allocation4 + $0x30] sm:$0xff] %vm1184_vm4, %v1270_v25 }
0x179b   :  { %1700 = shalt.err (!%p1697_p0)
}
0x179c   :  { %s1721_s3 = smov 128   ;;  %s1722_s8 = smov 8  }
0x179d   :  { %1292 = dma.vmem_to_hbm [thread:$0]  %s1287_s26, 1024, %s2048_s6, [#allocation5], %s1721_s3, %s1721_s3, %s1722_s8  }
0x179e   :  { %1709 = dma.done.wait [#allocation5], 1024  }
0x179f   :  { %1710 = vsyncadd [#allocation5], 4294966272 }
0x17a0   :  { %1711 = dma.done.wait [#allocation7], 256  }
0x17a1   :  { %1712 = vsyncadd [#allocation7], 4294967040 }
0x17a2   :  { %1322 = vsyncpa [#allocation5], 1 }
0x17a3   :  { %1323 = vsyncpa [#allocation7], 1 }

</bundles_post_ra>
